<compile_context>
chip_gen: v7x
topology: tpu7x:2x2x1
jax: 0.10.0
libtpu: 0.0.40
codegen_flags: <defaults>
</compile_context>

<pallas_src>
import math

import jax
import jax.numpy as jnp
from jax.experimental import pallas as pl
from jax.experimental.pallas import tpu as pltpu

_SQRT_2 = math.sqrt(2.0)


def _gelu_erf(x):
    # Exact BERT gelu: x * 0.5 * (1 + erf(x / sqrt(2))).  (VPU polynomial work; usually
    # hidden under the MXU.)
    return x * 0.5 * (1.0 + jax.lax.erf(x / _SQRT_2))


def _round_up(a, b):
    return -(-a // b) * b


def _cdiv(a, b):
    return -(-a // b)


def _sublane_multiple(dtype):
    return {4: 8, 2: 16, 1: 32}.get(jnp.dtype(dtype).itemsize, 8)


def _device_vmem_bytes():
    try:
        return int(pltpu.get_tpu_info().vmem_capacity_bytes)
    except Exception:
        return 64 * 1024 * 1024  # safe floor: v7x per-TensorCore VMEM


# ---------------------------------------------------------------------------
# Kernel bodies
# ---------------------------------------------------------------------------
def _mlp_kernel_resident(x_ref, w1_ref, b1_ref, w2_ref, b2_ref, o_ref):
    """1-D grid over token tiles; full-H weights stay resident in VMEM."""
    x = x_ref[...]
    h = jnp.dot(x, w1_ref[...], preferred_element_type=jnp.float32) + b1_ref[...]
    h = _gelu_erf(h)
    o = jnp.dot(h.astype(x.dtype), w2_ref[...], preferred_element_type=jnp.float32)
    o_ref[...] = (o + b2_ref[...]).astype(o_ref.dtype)


def _mlp_kernel_kred(x_ref, w1_ref, b1_ref, w2_ref, b2_ref, o_ref, acc_ref):
    """2-D grid (token tile i, hidden chunk k); f32 accumulator over k."""
    k = pl.program_id(1)

    @pl.when(k == 0)
    def _():
        acc_ref[...] = jnp.zeros_like(acc_ref)

    x = x_ref[...]
    # fc1 chunk: (TM, Cin_p) @ (Cin_p, TH) + (1, TH), f32 accumulation on the MXU.
    h = jnp.dot(x, w1_ref[...], preferred_element_type=jnp.float32) + b1_ref[...]
    h = _gelu_erf(h)
    # fc2 chunk: accumulate (TM, TH) @ (TH, Cout_p) into the f32 accumulator.
    acc_ref[...] += jnp.dot(h.astype(x.dtype), w2_ref[...],
                            preferred_element_type=jnp.float32)

    @pl.when(k == pl.num_programs(1) - 1)
    def _():
        o_ref[...] = (acc_ref[...] + b2_ref[...]).astype(o_ref.dtype)


# ---------------------------------------------------------------------------
# Wrapper
# ---------------------------------------------------------------------------
def _pad2d(a, rows, cols):
    r, c = a.shape
    if (r, c) == (rows, cols):
        return a  # already tile-aligned: no extra HBM pass
    return jnp.pad(a, ((0, rows - r), (0, cols - c)))


def mlp_pallas(x, w1, b1, w2, b2, *, tm_target=1024, th_target=2048,
               vmem_budget_bytes=None, compute_dtype=None):
    """x: (B, N, Cin); w1: (Cin, H); b1: (H,); w2: (H, Cout); b2: (Cout,).

    Weights are stored pre-transposed (in_features, out_features) so the kernel
    computes y = gelu(x @ W1 + b1) @ W2 + b2 directly on the MXU.
    `compute_dtype=jnp.bfloat16` runs both matmuls with bf16 operands (f32 accumulate).
    """
    B, N, Cin = x.shape
    H = w1.shape[1]
    Cout = w2.shape[1]
    M = B * N

    if compute_dtype is not None:
        x = x.astype(compute_dtype)
        w1, b1 = w1.astype(compute_dtype), b1.astype(compute_dtype)
        w2, b2 = w2.astype(compute_dtype), b2.astype(compute_dtype)

    dtype = x.dtype
    itemsize = jnp.dtype(dtype).itemsize
    sub_m = _sublane_multiple(dtype)

    # Lane-dense padded feature dims (128 keeps stores unmasked on all generations;
    # 256-multiples would only help MXU tail fill on v6e/v7x and waste pad for small C).
    cin_p = _round_up(Cin, 128)
    cout_p = _round_up(Cout, 128)
    h_full = _round_up(H, 128)

    vmem_cap = _device_vmem_bytes()
    if vmem_budget_bytes is None:
        # ~112 MiB on v5e/v6e (128 MiB VMEM), ~56 MiB per TC on v7x (64 MiB).
        vmem_budget_bytes = vmem_cap * 7 // 8

    # Token tile: split M into cdiv(M, tm_target) near-equal tiles, dtype-aware sublane
    # rounding.  Avoids up-to-2x padding waste when M is just above tm_target.
    n_m = max(1, _cdiv(M, tm_target))
    tm = max(sub_m, _round_up(_cdiv(M, n_m), sub_m))

    def vmem_use(tm_, th_, kred):
        buffered = 2 * (tm_ * cin_p        # x tile
                        + cin_p * th_      # W1 tile
                        + th_              # b1 tile
                        + th_ * cout_p     # W2 tile
                        + cout_p           # b2
                        + tm_ * cout_p     # out tile
                        ) * itemsize
        acc = tm_ * cout_p * 4 if kred else 0
        inter = tm_ * th_ * (4 + itemsize)  # f32 hidden intermediate + narrow cast copy
        return buffered + acc + inter

    # --- mode selection ------------------------------------------------------
    resident_weight_bytes = 2 * (cin_p * h_full + h_full * cout_p
                                 + h_full + cout_p) * itemsize
    resident = resident_weight_bytes <= vmem_budget_bytes // 2

    if resident:
        th = h_full
        # Weights fit: keep them resident, shrink the token tile only if needed.
        while vmem_use(tm, th, kred=False) > vmem_budget_bytes and tm > sub_m:
            tm = max(sub_m, _round_up(tm // 2, sub_m))
        h_p = h_full
    else:
        # Weights do not fit: k-reduction mode.  Keep tm large (arithmetic intensity
        # over the per-token-tile weight re-stream), shrink th first in 256 steps.
        th = min(_round_up(th_target, 128), h_full)
        while vmem_use(tm, th, kred=True) > vmem_budget_bytes and (th > 128 or tm > sub_m):
            if th > 256:
                th -= 256
            elif th > 128:
                th = 128
            else:
                tm = max(sub_m, _round_up(tm // 2, sub_m))
        h_p = _round_up(H, th)

    m_p = _round_up(M, tm)
    used = vmem_use(tm, th, kred=not resident)
    vmem_limit = int(min(vmem_cap, max(used + (8 << 20), 32 << 20)))

    # Zero-pad to tile multiples (exact); skipped entirely when already aligned, so
    # pre-padded weights (128-multiple feature dims) incur no extra HBM traffic.
    x2d = x.reshape(M, Cin)
    if (m_p, cin_p) != (M, Cin):
        x2d = jnp.pad(x2d, ((0, m_p - M), (0, cin_p - Cin)))
    w1_p = _pad2d(w1, cin_p, h_p)
    w2_p = _pad2d(w2, h_p, cout_p)
    b1_p = _pad2d(b1.reshape(1, H), 1, h_p)
    b2_p = _pad2d(b2.reshape(1, Cout), 1, cout_p)

    if resident:
        grid = (m_p // tm,)
        out_p = pl.pallas_call(
            _mlp_kernel_resident,
            out_shape=jax.ShapeDtypeStruct((m_p, cout_p), dtype),
            grid_spec=pltpu.PrefetchScalarGridSpec(
                num_scalar_prefetch=0,
                grid=grid,
                in_specs=[
                    pl.BlockSpec((tm, cin_p), lambda i: (i, 0)),     # x: per token tile
                    pl.BlockSpec((cin_p, h_p), lambda i: (0, 0)),    # W1: resident
                    pl.BlockSpec((1, h_p), lambda i: (0, 0)),        # b1: resident
                    pl.BlockSpec((h_p, cout_p), lambda i: (0, 0)),   # W2: resident
                    pl.BlockSpec((1, cout_p), lambda i: (0, 0)),     # b2: resident
                ],
                out_specs=pl.BlockSpec((tm, cout_p), lambda i: (i, 0)),
            ),
            compiler_params=pltpu.CompilerParams(
                dimension_semantics=("parallel",),
                vmem_limit_bytes=vmem_limit,
            ),
        )(x2d, w1_p, b1_p, w2_p, b2_p)
    else:
        grid = (m_p // tm, h_p // th)
        out_p = pl.pallas_call(
            _mlp_kernel_kred,
            out_shape=jax.ShapeDtypeStruct((m_p, cout_p), dtype),
            grid_spec=pltpu.PrefetchScalarGridSpec(
                num_scalar_prefetch=0,
                grid=grid,
                in_specs=[
                    pl.BlockSpec((tm, cin_p), lambda i, k: (i, 0)),    # x: per token tile
                    pl.BlockSpec((cin_p, th), lambda i, k: (0, k)),    # W1: per H chunk
                    pl.BlockSpec((1, th), lambda i, k: (0, k)),        # b1: per H chunk
                    pl.BlockSpec((th, cout_p), lambda i, k: (k, 0)),   # W2: per H chunk
                    pl.BlockSpec((1, cout_p), lambda i, k: (0, 0)),    # b2: constant
                ],
                out_specs=pl.BlockSpec((tm, cout_p), lambda i, k: (i, 0)),
                scratch_shapes=[pltpu.VMEM((tm, cout_p), jnp.float32)],
            ),
            compiler_params=pltpu.CompilerParams(
                dimension_semantics=("parallel", "arbitrary"),
                vmem_limit_bytes=vmem_limit,
            ),
        )(x2d, w1_p, b1_p, w2_p, b2_p)

    return out_p[:M, :Cout].reshape(B, N, Cout)


# ---------------------------------------------------------------------------
# Reference + test harness
# ---------------------------------------------------------------------------
def mlp_reference(x, w1, b1, w2, b2):
    h = jnp.einsum("bnc,ch->bnh", x, w1) + b1
    h = _gelu_erf(h)
    return jnp.einsum("bnh,ho->bno", h, w2) + b2


def _make_params(key, Cin, H, Cout, dtype=jnp.float32):
    kw1, kb1, kw2, kb2 = jax.random.split(key, 4)
    # PyTorch Linear stores weight as (out, in); we keep the transposed (in, out) layout.
    w1 = jax.random.normal(kw1, (Cin, H), dtype=dtype) * (1.0 / math.sqrt(Cin))
    b1 = jax.random.normal(kb1, (H,), dtype=dtype) * 0.01
    w2 = jax.random.normal(kw2, (H, Cout), dtype=dtype) * (1.0 / math.sqrt(H))
    b2 = jax.random.normal(kb2, (Cout,), dtype=dtype) * 0.01
    return w1, b1, w2, b2


if __name__ == "__main__":
    key = jax.random.PRNGKey(0)
    k1, k2, k3, k4, k5, k6 = jax.random.split(key, 6)

    # Test 1: small transformer-style Mlp (weight-resident path, single token tile).
    B, N, Cin, H, Cout = 2, 8, 32, 64, 32
    x = jax.random.normal(k1, (B, N, Cin), dtype=jnp.float32)
    w1, b1, w2, b2 = _make_params(k2, Cin, H, Cout)
    out = jax.block_until_ready(mlp_pallas(x, w1, b1, w2, b2))
    ref = mlp_reference(x, w1, b1, w2, b2)
    assert out.shape == (B, N, Cout)
    assert jnp.allclose(out, ref, atol=1e-4, rtol=1e-4), "test1 mismatch vs reference"

    # Test 2: non-128-aligned feature dims (padding paths), still weight-resident.
    B2, N2, Cin2, H2, Cout2 = 2, 136, 192, 640, 200
    x2 = jax.random.normal(k3, (B2, N2, Cin2), dtype=jnp.float32)
    w1b, b1b, w2b, b2b = _make_params(k4, Cin2, H2, Cout2)
    out2 = jax.block_until_ready(mlp_pallas(x2, w1b, b1b, w2b, b2b))
    ref2 = mlp_reference(x2, w1b, b1b, w2b, b2b)
    assert out2.shape == (B2, N2, Cout2)
    assert jnp.allclose(out2, ref2, atol=1e-3, rtol=1e-3), "test2 mismatch vs reference"

    # Test 3: force the k-reduction path (hidden-dim tiling + f32 accumulator) by
    # capping the VMEM budget, so both kernel variants are compiled and checked.
    B3, N3, Cin3, H3, Cout3 = 2, 192, 256, 1024, 256
    x3 = jax.random.normal(k5, (B3, N3, Cin3), dtype=jnp.float32)
    w1c, b1c, w2c, b2c = _make_params(k6, Cin3, H3, Cout3)
    out3 = jax.block_until_ready(
        mlp_pallas(x3, w1c, b1c, w2c, b2c, vmem_budget_bytes=4 * 1024 * 1024))
    ref3 = mlp_reference(x3, w1c, b1c, w2c, b2c)
    assert out3.shape == (B3, N3, Cout3)
    assert jnp.allclose(out3, ref3, atol=1e-3, rtol=1e-3), "test3 mismatch vs reference"

    print("KERNEL_OK")
</pallas_src>

<mosaic_0001>
module attributes {stable_mosaic.version = 11 : i64} {
  func.func @_mlp_kernel_resident(%arg0: i32, %arg1: memref<16x128xf32, #tpu.memory_space<vmem>>, %arg2: memref<128x128xf32, #tpu.memory_space<vmem>>, %arg3: memref<1x128xf32, #tpu.memory_space<vmem>>, %arg4: memref<128x128xf32, #tpu.memory_space<vmem>>, %arg5: memref<1x128xf32, #tpu.memory_space<vmem>>, %arg6: memref<16x128xf32, #tpu.memory_space<vmem>>) attributes {dimension_semantics = [#tpu.dimension_semantics<parallel>], iteration_bounds = array<i64: 1>, scalar_prefetch = 0 : i64, scratch_operands = 0 : i64, tpu.core_type = #tpu.core_type<tc>, window_params = [{transform_indices = @transform_0, window_bounds = array<i64: 16, 128>}, {pipeline_mode = #tpu.pipeline_mode<synchronous>, transform_indices = @transform_1, window_bounds = array<i64: 128, 128>}, {pipeline_mode = #tpu.pipeline_mode<synchronous>, transform_indices = @transform_2, window_bounds = array<i64: 1, 128>}, {pipeline_mode = #tpu.pipeline_mode<synchronous>, transform_indices = @transform_3, window_bounds = array<i64: 128, 128>}, {pipeline_mode = #tpu.pipeline_mode<synchronous>, transform_indices = @transform_4, window_bounds = array<i64: 1, 128>}, {transform_indices = @transform_5, window_bounds = array<i64: 16, 128>}]} {
    %c0 = arith.constant 0 : index
    %c0_0 = arith.constant 0 : index
    %0 = vector.load %arg1[%c0, %c0_0] : memref<16x128xf32, #tpu.memory_space<vmem>>, vector<16x128xf32>
    %c0_1 = arith.constant 0 : index
    %c0_2 = arith.constant 0 : index
    %1 = vector.load %arg2[%c0_1, %c0_2] : memref<128x128xf32, #tpu.memory_space<vmem>>, vector<128x128xf32>
    %cst = arith.constant dense<0.000000e+00> : vector<16x128xf32>
    %2 = tpu.matmul %0, %1, %cst {dimension_numbers = #tpu.dot_dimension_numbers<[1], [0], [0], [1], [0, 0, 1, 1], [], []>} : vector<16x128xf32>, vector<128x128xf32>, vector<16x128xf32> -> vector<16x128xf32>
    %c0_3 = arith.constant 0 : index
    %c0_4 = arith.constant 0 : index
    %3 = vector.load %arg3[%c0_3, %c0_4] : memref<1x128xf32, #tpu.memory_space<vmem>>, vector<1x128xf32>
    %4 = vector.broadcast %3 : vector<1x128xf32> to vector<16x128xf32>
    %5 = arith.addf %2, %4 : vector<16x128xf32>
    %cst_5 = arith.constant 5.000000e-01 : f32
    %6 = vector.broadcast %cst_5 : f32 to vector<16x128xf32>
    %7 = arith.mulf %5, %6 : vector<16x128xf32>
    %cst_6 = arith.constant 1.41421354 : f32
    %8 = vector.broadcast %cst_6 : f32 to vector<16x128xf32>
    %9 = arith.divf %5, %8 : vector<16x128xf32>
    %10 = math.erf %9 : vector<16x128xf32>
    %cst_7 = arith.constant 1.000000e+00 : f32
    %11 = vector.broadcast %cst_7 : f32 to vector<16x128xf32>
    %12 = arith.addf %11, %10 : vector<16x128xf32>
    %13 = arith.mulf %7, %12 : vector<16x128xf32>
    %c0_8 = arith.constant 0 : index
    %c0_9 = arith.constant 0 : index
    %14 = vector.load %arg4[%c0_8, %c0_9] : memref<128x128xf32, #tpu.memory_space<vmem>>, vector<128x128xf32>
    %cst_10 = arith.constant dense<0.000000e+00> : vector<16x128xf32>
    %15 = tpu.matmul %13, %14, %cst_10 {dimension_numbers = #tpu.dot_dimension_numbers<[1], [0], [0], [1], [0, 0, 1, 1], [], []>} : vector<16x128xf32>, vector<128x128xf32>, vector<16x128xf32> -> vector<16x128xf32>
    %c0_11 = arith.constant 0 : index
    %c0_12 = arith.constant 0 : index
    %16 = vector.load %arg5[%c0_11, %c0_12] : memref<1x128xf32, #tpu.memory_space<vmem>>, vector<1x128xf32>
    %17 = vector.broadcast %16 : vector<1x128xf32> to vector<16x128xf32>
    %18 = arith.addf %15, %17 : vector<16x128xf32>
    %c0_13 = arith.constant 0 : index
    %c0_14 = arith.constant 0 : index
    %19 = vector.load %arg6[%c0_13, %c0_14] : memref<16x128xf32, #tpu.memory_space<vmem>>, vector<16x128xf32>
    tpu.vector_store %arg6[%c0_13, %c0_14], %18 {strides = array<i32>} : memref<16x128xf32, #tpu.memory_space<vmem>>, vector<16x128xf32>,
    return
  }
  func.func @transform_0(%arg0: i32) -> (i32, i32) {
    %c0_i32 = arith.constant 0 : i32
    %c0_i32_0 = arith.constant 0 : i32
    return %arg0, %c0_i32 : i32, i32
  }
  func.func @transform_1(%arg0: i32) -> (i32, i32) {
    %c0_i32 = arith.constant 0 : i32
    %c0_i32_0 = arith.constant 0 : i32
    %c0_i32_1 = arith.constant 0 : i32
    return %c0_i32, %c0_i32_0 : i32, i32
  }
  func.func @transform_2(%arg0: i32) -> (i32, i32) {
    %c0_i32 = arith.constant 0 : i32
    %c0_i32_0 = arith.constant 0 : i32
    %c0_i32_1 = arith.constant 0 : i32
    return %c0_i32, %c0_i32_0 : i32, i32
  }
  func.func @transform_3(%arg0: i32) -> (i32, i32) {
    %c0_i32 = arith.constant 0 : i32
    %c0_i32_0 = arith.constant 0 : i32
    %c0_i32_1 = arith.constant 0 : i32
    return %c0_i32, %c0_i32_0 : i32, i32
  }
  func.func @transform_4(%arg0: i32) -> (i32, i32) {
    %c0_i32 = arith.constant 0 : i32
    %c0_i32_0 = arith.constant 0 : i32
    %c0_i32_1 = arith.constant 0 : i32
    return %c0_i32, %c0_i32_0 : i32, i32
  }
  func.func @transform_5(%arg0: i32) -> (i32, i32) {
    %c0_i32 = arith.constant 0 : i32
    %c0_i32_0 = arith.constant 0 : i32
    return %arg0, %c0_i32 : i32, i32
  }
}

</mosaic_0001>

<bundles_post_ra>
// kernel: tpu_custom_call.1
= control target key start
LH: loop header
LB: loop body
LE: loop exit
PB: predicated region body
PF: predicated region fallthrough
CT: control target
= control target key end

     0   :  { %10 = vsyncpa [#allocation3], 0  ;;  %s676_s0 = inlined_call_operand.hbm [shape: f32[16,128], index: 0, kind: input, shape index: {}]   ;;  %s677_s1 = inlined_call_operand.hbm [shape: f32[128,128], index: 1, kind: input, shape index: {}]   ;;  %s678_s2 = inlined_call_operand.vmem [shape: f32[1,128], index: 2, kind: input, shape index: {}]   ;;  %s679_s3 = inlined_call_operand.hbm [shape: f32[128,128], index: 3, kind: input, shape index: {}]   ;;  %s680_s4 = inlined_call_operand.vmem [shape: f32[1,128], index: 4, kind: input, shape index: {}]   ;;  %s681_s5 = inlined_call_operand.hbm [shape: f32[16,128], index: 5, kind: output, shape index: {}]  }
   0x1   :  { %11 = vsyncpa [#allocation6], 0 }
   0x2   :  { %12 = vsyncpa [#allocation4], 0  ;;  %s567_s18 = smov [#allocation5]   ;;  %s568_s20 = smov [#allocation2]  }
   0x3   :  { %s30_s19 = sshll.u32 %s567_s18, 4  ;;  %s18_s21 = sshll.u32 %s568_s20, 4  ;;  %s31_s19 = int_to_ptr.vmem [resolvable:$true] %s30_s19  ;;  %s603_s21 = int_to_ptr.vmem [resolvable:$true] %s18_s21 }
   0x4   :  { %s473_s24 = scalar_lea.hbm %s677_s1, 2048 }
   0x5   :  { %p474_p0 = scmp.ne.s32.totalorder %s677_s1, %s473_s24  ;;  %p477_p1 = scmp.lt.u32.totalorder %s473_s24, %s677_s1 }
   0x7   :  { %p479_p2 = pnand %p477_p1, %p474_p0 }
   0x9   :  { %482 = shalt.err (!%p479_p2)
}
   0xa   :  { %s483_s29 = scalar_lea.vmem %s31_s19, 2048  ;;  %p488_p4 = scmp.lt.s32.totalorder %s31_s19, %s31_s19 }
   0xb   :  { %p484_p3 = scmp.ne.s32.totalorder %s31_s19, %s483_s29  ;;  %p489_p5 = scmp.lt.s32.totalorder %s483_s29, %s483_s29 }
   0xd   :  { %p490_p6 = por %p489_p5, %p488_p4 }
   0xf   :  { %p491_p7 = pnand %p490_p6, %p484_p3 }
  0x11   :  { %494 = shalt.err (!%p491_p7)
}
  0x12   :  { %s569_s30 = smov 128   ;;  %s570_s6 = smov 8  }
  0x13   :  { %36 = dma.hbm_to_vmem [thread:$0]  %s677_s1, 2048, %s31_s19, [#allocation6], %s569_s30, %s569_s30, %s570_s6  }
  0x14   :  { %s495_s11 = scalar_lea.hbm %s676_s0, 256 }
  0x15   :  { %p496_p8 = scmp.ne.s32.totalorder %s676_s0, %s495_s11  ;;  %p499_p9 = scmp.lt.u32.totalorder %s495_s11, %s676_s0 }
  0x17   :  { %p501_p10 = pnand %p499_p9, %p496_p8 }
  0x19   :  { %504 = shalt.err (!%p501_p10)
}
  0x1a   :  { %s505_s16 = scalar_lea.vmem %s603_s21, 256  ;;  %p510_p12 = scmp.lt.s32.totalorder %s603_s21, %s603_s21 }
  0x1b   :  { %p506_p11 = scmp.ne.s32.totalorder %s603_s21, %s505_s16  ;;  %p511_p13 = scmp.lt.s32.totalorder %s505_s16, %s505_s16 }
  0x1d   :  { %p512_p0 = por %p511_p13, %p510_p12 }
  0x1f   :  { %p513_p1 = pnand %p512_p0, %p506_p11 }
  0x21   :  { %516 = shalt.err (!%p513_p1)
}
  0x22   :  { %24 = dma.hbm_to_vmem [thread:$0]  %s676_s0, 256, %s603_s21, [#allocation3], %s569_s30, %s569_s30, %s570_s6  }
  0x23   :  { %s571_s18 = smov [#allocation7]   ;;  %s517_s23 = scalar_lea.hbm %s679_s3, 2048 }
  0x24   :  { %s44_s19 = sshll.u32 %s571_s18, 4  ;;  %p518_p2 = scmp.ne.s32.totalorder %s679_s3, %s517_s23  ;;  %s45_s19 = int_to_ptr.vmem [resolvable:$true] %s44_s19 }
  0x25   :  { %p521_p3 = scmp.lt.u32.totalorder %s517_s23, %s679_s3 }
  0x27   :  { %p523_p4 = pnand %p521_p3, %p518_p2 }
  0x29   :  { %526 = shalt.err (!%p523_p4)
}
  0x2a   :  { %s527_s28 = scalar_lea.vmem %s45_s19, 2048  ;;  %p532_p6 = scmp.lt.s32.totalorder %s45_s19, %s45_s19 }
  0x2b   :  { %p528_p5 = scmp.ne.s32.totalorder %s45_s19, %s527_s28  ;;  %p533_p7 = scmp.lt.s32.totalorder %s527_s28, %s527_s28 }
  0x2d   :  { %p534_p8 = por %p533_p7, %p532_p6 }
  0x2f   :  { %p535_p9 = pnand %p534_p8, %p528_p5 }
  0x31   :  { %538 = shalt.err (!%p535_p9)
}
  0x32   :  { %50 = dma.hbm_to_vmem [thread:$0]  %s679_s3, 2048, %s45_s19, [#allocation6], %s569_s30, %s569_s30, %s570_s6  }
  0x33   :  { %561 = dma.done.wait [#allocation3], 256  }
  0x34   :  { %562 = vsyncadd [#allocation3], 4294967040 }
  0x35   :  { %563 = dma.done.wait [#allocation6], 4096  }
  0x36   :  { %564 = vsyncadd [#allocation6], 4294963200  ;;  %v64_v0 = vld [vmem:[#allocation5] sm:$0xff]  ;;  %v65_v1 = vld [vmem:[#allocation5 + $0x8] sm:$0xff]  ;;  %s572_s8 = smov [#allocation8]  }
  0x37   :  { %v66_v2 = vld [vmem:[#allocation5 + $0x10] sm:$0xff]  ;;  %v399_v3 = vpack.c.bf16 %v65_v1, %v64_v0  ;;  %v67_v4 = vld [vmem:[#allocation5 + $0x18] sm:$0xff]  ;;  %v68_v6 = vld [vmem:[#allocation5 + $0x20] sm:$0xff]  ;;  %s278_s9 = sshll.u32 %s572_s8, 4  ;;  %s279_s9 = int_to_ptr.vmem [resolvable:$true] %s278_s9 }
  0x38   :  { %v403_v5 = vpack.c.bf16 %v67_v4, %v66_v2  ;;  %v69_v7 = vld [vmem:[#allocation5 + $0x28] sm:$0xff]  ;;  %v70_v9 = vld [vmem:[#allocation5 + $0x30] sm:$0xff]  ;;  %v71_v10 = vld [vmem:[#allocation5 + $0x38] sm:$0xff]  ;;  %s539_s10 = scalar_lea.vmem %s279_s9, 256  ;;  %p544_p11 = scmp.lt.s32.totalorder %s279_s9, %s279_s9 }
  0x39   :  { %400 = vmatprep.subr.bf16.mxu0 %v399_v3  ;;  %v407_v8 = vpack.c.bf16 %v69_v7, %v68_v6  ;;  %v62_v11 = vld [vmem:[#allocation2] sm:$0xff]  ;;  %v173_v12 = vld [vmem:[#allocation7] sm:$0xff]  ;;  %v174_v13 = vld [vmem:[#allocation7 + $0x8] sm:$0xff]  ;;  %v411_v20 = vpack.c.bf16 %v71_v10, %v70_v9  ;;  %p540_p10 = scmp.ne.s32.totalorder %s279_s9, %s539_s10  ;;  %p545_p12 = scmp.lt.s32.totalorder %s539_s10, %s539_s10 }
  0x3a   :  { %402 = vmatpush3.bf16.msra.mxu0 %v399_v3  ;;  %361 = vmatprep.mubr.f32.mxu0 %v62_v11  ;;  %v175_v14 = vld [vmem:[#allocation7 + $0x10] sm:$0xff]  ;;  %v431_v15 = vpack.c.bf16 %v174_v13, %v173_v12  ;;  %v176_v16 = vld [vmem:[#allocation7 + $0x18] sm:$0xff]  ;;  %v177_v18 = vld [vmem:[#allocation7 + $0x20] sm:$0xff] }
  0x3b   :  { %404 = vmatprep.subr.bf16.mxu0 %v403_v5  ;;  %v435_v17 = vpack.c.bf16 %v176_v16, %v175_v14  ;;  %v178_v19 = vld [vmem:[#allocation7 + $0x28] sm:$0xff]  ;;  %v72_v21 = vld [vmem:[#allocation5 + $0x40] sm:$0xff]  ;;  %v74_v25 = vld [vmem:[#allocation5 + $0x50] sm:$0xff]  ;;  %p546_p13 = por %p545_p12, %p544_p11 }
  0x3c   :  { %432 = vmatprep.subr.bf16.mxu1 %v431_v15  ;;  %v73_v22 = vld [vmem:[#allocation5 + $0x48] sm:$0xff]  ;;  %v439_v23 = vpack.c.bf16 %v178_v19, %v177_v18  ;;  %v75_v26 = vld [vmem:[#allocation5 + $0x58] sm:$0xff]  ;;  %v76_v28 = vld [vmem:[#allocation5 + $0x60] sm:$0xff] }
  0x3d   :  { %434 = vmatpush3.bf16.msra.mxu1 %v431_v15  ;;  %v415_v24 = vpack.c.bf16 %v73_v22, %v72_v21  ;;  %v419_v27 = vpack.c.bf16 %v75_v26, %v74_v25  ;;  %v77_v29 = vld [vmem:[#allocation5 + $0x68] sm:$0xff]  ;;  %v78_v31 = vld [vmem:[#allocation5 + $0x70] sm:$0xff]  ;;  %v79_v32 = vld [vmem:[#allocation5 + $0x78] sm:$0xff]  ;;  %p547_p0 = pnand %p546_p13, %p540_p10 }
  0x3e   :  { %406 = vmatpush3.bf16.msra.mxu0 %v403_v5  ;;  %436 = vmatprep.subr.bf16.mxu1 %v435_v17  ;;  %v423_v30 = vpack.c.bf16 %v77_v29, %v76_v28  ;;  %v427_v33 = vpack.c.bf16 %v79_v32, %v78_v31  ;;  %v63_v34 = vld [vmem:[#allocation2 + $0x8] sm:$0xff]  ;;  %v179_v35 = vld [vmem:[#allocation7 + $0x30] sm:$0xff]  ;;  %v181_v38 = vld [vmem:[#allocation7 + $0x40] sm:$0xff] }
  0x3f   :  { %408 = vmatprep.subr.bf16.mxu0 %v407_v8  ;;  %v180_v36 = vld [vmem:[#allocation7 + $0x38] sm:$0xff]  ;;  %v182_v39 = vld [vmem:[#allocation7 + $0x48] sm:$0xff]  ;;  %v183_v41 = vld [vmem:[#allocation7 + $0x50] sm:$0xff] }
  0x40   :  { %v443_v37 = vpack.c.bf16 %v180_v36, %v179_v35  ;;  %v447_v40 = vpack.c.bf16 %v182_v39, %v181_v38  ;;  %v184_v42 = vld [vmem:[#allocation7 + $0x58] sm:$0xff]  ;;  %v185_v44 = vld [vmem:[#allocation7 + $0x60] sm:$0xff]  ;;  %v186_v45 = vld [vmem:[#allocation7 + $0x68] sm:$0xff] }
  0x41   :  { %438 = vmatpush3.bf16.msra.mxu1 %v435_v17  ;;  %v451_v43 = vpack.c.bf16 %v184_v42, %v183_v41  ;;  %v455_v46 = vpack.c.bf16 %v186_v45, %v185_v44  ;;  %v187_v47 = vld [vmem:[#allocation7 + $0x70] sm:$0xff]  ;;  %v188_v48 = vld [vmem:[#allocation7 + $0x78] sm:$0xff] }
  0x42   :  { %410 = vmatpush3.bf16.msra.mxu0 %v407_v8  ;;  %440 = vmatprep.subr.bf16.mxu1 %v439_v23  ;;  %v459_v49 = vpack.c.bf16 %v188_v48, %v187_v47  ;;  %v291_v50 = vld [vmem:[%s678_s2] ss:$0 sm:$0xff] }
  0x43   :  { %412 = vmatprep.subr.bf16.mxu0 %v411_v20  ;;  %v292_v1 = vld [vmem:[%s680_s4] ss:$0 sm:$0xff] }
  0x45   :  { %442 = vmatpush3.bf16.msra.mxu1 %v439_v23 }
  0x46   :  { %414 = vmatpush3.bf16.msra.mxu0 %v411_v20  ;;  %444 = vmatprep.subr.bf16.mxu1 %v443_v37 }
  0x47   :  { %416 = vmatprep.subr.bf16.mxu0 %v415_v24 }
  0x49   :  { %446 = vmatpush3.bf16.msra.mxu1 %v443_v37 }
  0x4a   :  { %418 = vmatpush3.bf16.msra.mxu0 %v415_v24  ;;  %448 = vmatprep.subr.bf16.mxu1 %v447_v40 }
  0x4b   :  { %420 = vmatprep.subr.bf16.mxu0 %v419_v27 }
  0x4d   :  { %450 = vmatpush3.bf16.msra.mxu1 %v447_v40 }
  0x4e   :  { %422 = vmatpush3.bf16.msra.mxu0 %v419_v27  ;;  %452 = vmatprep.subr.bf16.mxu1 %v451_v43 }
  0x4f   :  { %424 = vmatprep.subr.bf16.mxu0 %v423_v30 }
  0x51   :  { %454 = vmatpush3.bf16.msra.mxu1 %v451_v43 }
  0x52   :  { %426 = vmatpush3.bf16.msra.mxu0 %v423_v30  ;;  %456 = vmatprep.subr.bf16.mxu1 %v455_v46 }
  0x53   :  { %428 = vmatprep.subr.bf16.mxu0 %v427_v33 }
  0x55   :  { %458 = vmatpush3.bf16.msra.mxu1 %v455_v46 }
  0x56   :  { %430 = vmatpush3.bf16.msra.mxu0 %v427_v33  ;;  %460 = vmatprep.subr.bf16.mxu1 %v459_v49 }
  0x59   :  { %362 = vmatmul.mubr.f32.vlgmr.msra.gmra.mrb[0].mxu0 %v63_v34  ;;  %462 = vmatpush3.bf16.msra.mxu1 %v459_v49 }
 0x12c   :  { %v363_v51 = vpop.f32.mrb[0].mxu0 }
 0x12d   :  { %v159_v52 = vadd.f32 %v363_v51, %v291_v50  ;;  %v153_v53 = vpop.f32.mrb[1].mxu0 }
 0x12e   :  { %v154_v54 = vadd.f32 %v291_v50, %v153_v53 }
 0x12f   :  { %v166_v55 = vmul.f32 0.70710677, %v159_v52  ;;  %v163_v62 = vmul.f32 0.5, %v159_v52 }
 0x130   :  { %v165_v56 = vmul.f32 0.70710677, %v154_v54  ;;  %v162_v60 = vmul.f32 0.5, %v154_v54 }
 0x131   :  { %469 = verf.f32 %v166_v55 }
 0x132   :  { %471 = verf.f32 %v165_v56 }
 0x13b   :  { %v470_v57 = vpop.eup %469 }
 0x13c   :  { %v472_v58 = vpop.eup %471  ;;  %v170_v59 = vadd.f32 1.0, %v470_v57 }
 0x13d   :  { %v169_v61 = vadd.f32 1.0, %v472_v58 }
 0x13e   :  { %v172_v0 = vmul.f32 %v170_v59, %v163_v62 }
 0x13f   :  { %v171_v63 = vmul.f32 %v169_v61, %v162_v60 }
 0x141   :  { %396 = vmatprep.mubr.f32.mxu1 %v171_v63 }
 0x142   :  { %397 = vmatmul.mubr.f32.vlgmr.msra.gmra.mrb[0].mxu1 %v172_v0 }
 0x215   :  { %v398_v2 = vpop.f32.mrb[0].mxu1 }
 0x216   :  { %v268_v3 = vadd.f32 %v398_v2, %v292_v1  ;;  %v262_v4 = vpop.f32.mrb[1].mxu1 }
 0x217   :  { %v263_v5 = vadd.f32 %v292_v1, %v262_v4 }
 0x218   :  { %272 = vst [vmem:[#allocation8 + $0x8] sm:$0xff] %v268_v3 }
 0x219   :  { %271 = vst [vmem:[#allocation8] sm:$0xff] %v263_v5 }
 0x21a   :  { %550 = shalt.err (!%p547_p0)
}
 0x21b   :  { %s551_s4 = scalar_lea.hbm %s681_s5, 256 }
 0x21c   :  { %p552_p1 = scmp.ne.s32.totalorder %s681_s5, %s551_s4  ;;  %p555_p2 = scmp.lt.u32.totalorder %s551_s4, %s681_s5 }
 0x21e   :  { %p557_p3 = pnand %p555_p2, %p552_p1 }
 0x220   :  { %560 = shalt.err (!%p557_p3)
}
 0x221   :  { %284 = dma.vmem_to_hbm [thread:$0]  %s279_s9, 256, %s681_s5, [#allocation4], %s569_s30, %s569_s30, %s570_s6  }
 0x222   :  { %565 = dma.done.wait [#allocation4], 256  }
 0x223   :  { %566 = vsyncadd [#allocation4], 4294967040 }
 0x224   :  { %288 = vsyncpa [#allocation3], 1 }
 0x225   :  { %289 = vsyncpa [#allocation6], 1 }
 0x226   :  { %290 = vsyncpa [#allocation4], 1 }

</bundles_post_ra>
